<compile_context>
chip_gen: v7x
topology: tpu7x:2x2x1
jax: 0.10.0
libtpu: 0.0.40
codegen_flags: <defaults>
</compile_context>

<pallas_src>
import functools

import jax
import jax.numpy as jnp
from jax.experimental import pallas as pl
from jax.experimental.pallas import tpu as pltpu

_OUT_LANES = 128  # lane-dense logits slab width (real logits live in lanes 0..1)
_O_PAD = 128      # fc2 output dim padded to a full MXU column group


def _comparenet_kernel(x1_ref, x2_ref, w1_ref, b1_ref, w2_ref, b2_ref,
                       w3_ref, b3_ref, out_ref):
    """One batch tile of CompareNet: fc1+ReLU on both branches, fc2+ReLU over
    concat(h1, h1*h2, h2) expressed as a sum of three matmuls, then fc3."""
    # fc1 (DenseBlock) -- one MXU dot per branch, f32 accumulation.
    h1 = jnp.dot(x1_ref[...], w1_ref[...], preferred_element_type=jnp.float32)
    h2 = jnp.dot(x2_ref[...], w1_ref[...], preferred_element_type=jnp.float32)

    # Bias + ReLU + h1*h2 in the elementwise dtype picked by the wrapper:
    # bf16 on v6e/v7x (native bf16 VPU), f32 on v5e (no bf16 VPU).
    ew = b1_ref.dtype
    h1 = jnp.maximum(h1.astype(ew) + b1_ref[...], 0)
    h2 = jnp.maximum(h2.astype(ew) + b1_ref[...], 0)
    hm = h1 * h2

    h1b = h1.astype(jnp.bfloat16)
    h2b = h2.astype(jnp.bfloat16)
    hmb = hm.astype(jnp.bfloat16)

    # fc2 (DenseBlock) over concat([h1, h1*h2, h2], dim=1):
    #   concat @ W2 == h1 @ W2[0] + (h1*h2) @ W2[1] + h2 @ W2[2]
    # Output dim is zero-padded to 128 -> z and b2 are lane-dense.
    z = (jnp.dot(h1b, w2_ref[0], preferred_element_type=jnp.float32)
         + jnp.dot(hmb, w2_ref[1], preferred_element_type=jnp.float32)
         + jnp.dot(h2b, w2_ref[2], preferred_element_type=jnp.float32)
         + b2_ref[...])
    z = jnp.maximum(z, 0.0)                                   # (TM, 128) f32

    # fc3: plain Linear, zero-padded to 128 output lanes (padded w3 rows are
    # zero). bf16 store halves the HBM write traffic of the lane-dense slab.
    out = (jnp.dot(z.astype(jnp.bfloat16), w3_ref[...],
                   preferred_element_type=jnp.float32) + b3_ref[...])
    out_ref[...] = out.astype(out_ref.dtype)


def _vmem_bytes_estimate(tile_m, d_in, hidden):
    """Rough per-step VMEM footprint: double-buffered weights/tiles + the
    dominant (TM, H) intermediates (f32 accum + bf16/f32 elementwise copies)."""
    weights = 2 * ((d_in * hidden + 3 * hidden * _O_PAD + _O_PAD * _OUT_LANES) * 2
                   + (hidden + _O_PAD + _OUT_LANES) * 4)
    tiles = 2 * (2 * tile_m * d_in * 2) + 2 * (tile_m * _OUT_LANES * 2)
    inter = 2 * tile_m * hidden * (4 + 2) + tile_m * _O_PAD * 4
    return weights + tiles + inter


@functools.partial(jax.jit, static_argnames=("tile_m", "bf16_elementwise"))
def fsm_comparenet(x1, x2, params, *, tile_m=256, bf16_elementwise=True):
    """x1, x2: [B, input_dim] FE features (f32). Returns [B, 2] logits (f32).

    For production batches pick tile_m so the grid has >= 4 steps per
    TensorCore (the batch axis is 'parallel' and is sharded across cores);
    keep tile_m >= 128 on v6e/v7x so the fc1 M dim stays MXU-friendly.
    """
    w1, b1, w2, b2, w3, b3 = (params["w1"], params["b1"], params["w2"],
                              params["b2"], params["w3"], params["b3"])
    B, D_in = x1.shape
    H = w1.shape[1]
    O = w3.shape[0]

    # Pad batch to a multiple of tile_m (padded rows are sliced away below).
    nblk = pl.cdiv(B, tile_m)
    Bp = nblk * tile_m
    pad = Bp - B
    if pad:
        x1 = jnp.pad(x1, ((0, pad), (0, 0)))
        x2 = jnp.pad(x2, ((0, pad), (0, 0)))
    x1b = x1.astype(jnp.bfloat16)
    x2b = x2.astype(jnp.bfloat16)

    ew_dtype = jnp.bfloat16 if bf16_elementwise else jnp.float32

    # bf16 matmul operands; bias for fc1 in the elementwise dtype.
    w1b = w1.astype(jnp.bfloat16)
    b1e = b1.astype(ew_dtype).reshape(1, H)

    # fc2: zero-pad output dim O -> 128 (lane-dense, free on the MXU).
    w2p = jnp.zeros((3, H, _O_PAD), jnp.bfloat16).at[:, :, :O].set(
        w2.astype(jnp.bfloat16))
    b2p = jnp.zeros((1, _O_PAD), jnp.float32).at[:, :O].set(
        b2.astype(jnp.float32).reshape(1, O))

    # fc3: zero-pad (O, 2) -> (128, 128); padded rows/lanes contribute zero.
    w3p = jnp.zeros((_O_PAD, _OUT_LANES), jnp.bfloat16).at[:O, :2].set(
        w3.astype(jnp.bfloat16))
    b3p = jnp.zeros((1, _OUT_LANES), jnp.float32).at[:, :2].set(
        b3.astype(jnp.float32).reshape(1, 2))

    # Raise the scoped-VMEM limit only when the estimate calls for it
    # (v7x: 64 MiB physical, 32 MiB scoped default).
    est = _vmem_bytes_estimate(tile_m, D_in, H)
    vmem_limit = min(est + (8 << 20), 60 << 20) if est > (24 << 20) else None
    # TODO(synk): on v7x, single-buffering the constant weight blocks via
    #             pipeline_mode=pl.Buffered(1) would reclaim further VMEM.

    full2 = lambda i: (0, 0)
    out = pl.pallas_call(
        _comparenet_kernel,
        out_shape=jax.ShapeDtypeStruct((Bp, _OUT_LANES), jnp.bfloat16),
        grid_spec=pltpu.PrefetchScalarGridSpec(
            num_scalar_prefetch=0,
            grid=(nblk,),
            in_specs=[
                pl.BlockSpec((tile_m, D_in), lambda i: (i, 0)),     # x1 tile
                pl.BlockSpec((tile_m, D_in), lambda i: (i, 0)),     # x2 tile
                pl.BlockSpec((D_in, H), full2),                     # w1
                pl.BlockSpec((1, H), full2),                        # b1
                pl.BlockSpec((3, H, _O_PAD), lambda i: (0, 0, 0)),  # w2 (padded)
                pl.BlockSpec((1, _O_PAD), full2),                   # b2 (padded)
                pl.BlockSpec((_O_PAD, _OUT_LANES), full2),          # w3 (padded)
                pl.BlockSpec((1, _OUT_LANES), full2),               # b3 (padded)
            ],
            out_specs=pl.BlockSpec((tile_m, _OUT_LANES), lambda i: (i, 0)),
        ),
        compiler_params=pltpu.CompilerParams(
            dimension_semantics=("parallel",),
            vmem_limit_bytes=vmem_limit),
    )(x1b, x2b, w1b, b1e, w2p, b2p, w3p, b3p)

    return out[:B, :2].astype(jnp.float32)


def _use_bf16_elementwise():
    """bf16 elementwise on v6e/v7x; f32 on v5e and older (no bf16 VPU)."""
    try:
        kind = jax.devices()[0].device_kind.lower()
    except Exception:
        return True
    return not any(v in kind for v in ("v2", "v3", "v4", "v5"))


def init_params(key, input_dim, hidden_dim, output_dim):
    """Deterministic synthetic weights for CompareNet (fc1, fc2, fc3)."""
    ks = jax.random.split(key, 6)
    scale = 0.02
    w1 = scale * jax.random.normal(ks[0], (input_dim, hidden_dim), jnp.float32)
    b1 = scale * jax.random.normal(ks[1], (1, hidden_dim), jnp.float32)
    # fc2 input is concat(x1h, x1h*x2h, x2h) -> store as [3, H, O]
    w2 = scale * jax.random.normal(ks[2], (3, hidden_dim, output_dim),
                                   jnp.float32)
    b2 = scale * jax.random.normal(ks[3], (1, output_dim), jnp.float32)
    w3 = scale * jax.random.normal(ks[4], (output_dim, 2), jnp.float32)
    b3 = scale * jax.random.normal(ks[5], (1, 2), jnp.float32)
    return dict(w1=w1, b1=b1, w2=w2, b2=b2, w3=w3, b3=b3)


def reference(x1, x2, p):
    """Pure-JAX f32 reference (mirrors CompareNet.forward)."""
    h1 = jnp.maximum(x1 @ p["w1"] + p["b1"], 0.0)
    h2 = jnp.maximum(x2 @ p["w1"] + p["b1"], 0.0)
    cat = jnp.concatenate([h1, h1 * h2, h2], axis=1)
    w2_flat = p["w2"].reshape(-1, p["w2"].shape[-1])
    z = jnp.maximum(cat @ w2_flat + p["b2"], 0.0)
    return z @ p["w3"] + p["b3"]


if __name__ == "__main__":
    # Small demo shapes (module defaults are hidden=2048, out=64; scaled down).
    B, INPUT_DIM, HIDDEN_DIM, OUTPUT_DIM = 200, 128, 256, 64
    TILE_M = 64   # B=200 -> Bp=256 -> grid=(4,): >=2 pipelined steps per core.

    key = jax.random.PRNGKey(0)
    k_x1, k_x2, k_p = jax.random.split(key, 3)
    # FE features for the two image patches (see TODO(synk) above).
    x1 = jax.random.normal(k_x1, (B, INPUT_DIM), jnp.float32)
    x2 = jax.random.normal(k_x2, (B, INPUT_DIM), jnp.float32)
    params = init_params(k_p, INPUT_DIM, HIDDEN_DIM, OUTPUT_DIM)

    out = fsm_comparenet(x1, x2, params, tile_m=TILE_M,
                         bf16_elementwise=_use_bf16_elementwise())
    out = jax.block_until_ready(out)

    ref = reference(x1, x2, params)
    assert out.shape == (B, 2), out.shape
    # bf16 matmul operands / bf16 output store vs f32 reference -> relaxed tol.
    assert jnp.allclose(out, ref, atol=2e-2, rtol=2e-2), (
        float(jnp.max(jnp.abs(out - ref))))

    print("KERNEL_OK")
</pallas_src>

<mosaic_0001>
module attributes {stable_mosaic.version = 11 : i64} {
  func.func @_comparenet_kernel(%arg0: i32, %arg1: memref<64x128xbf16, #tpu.memory_space<vmem>>, %arg2: memref<64x128xbf16, #tpu.memory_space<vmem>>, %arg3: memref<128x256xbf16, #tpu.memory_space<vmem>>, %arg4: memref<1x256xbf16, #tpu.memory_space<vmem>>, %arg5: memref<3x256x128xbf16, #tpu.memory_space<vmem>>, %arg6: memref<1x128xf32, #tpu.memory_space<vmem>>, %arg7: memref<128x128xbf16, #tpu.memory_space<vmem>>, %arg8: memref<1x128xf32, #tpu.memory_space<vmem>>, %arg9: memref<64x128xbf16, #tpu.memory_space<vmem>>) attributes {dimension_semantics = [#tpu.dimension_semantics<parallel>], iteration_bounds = array<i64: 4>, scalar_prefetch = 0 : i64, scratch_operands = 0 : i64, tpu.core_type = #tpu.core_type<tc>, window_params = [{transform_indices = @transform_0, window_bounds = array<i64: 64, 128>}, {transform_indices = @transform_1, window_bounds = array<i64: 64, 128>}, {pipeline_mode = #tpu.pipeline_mode<synchronous>, transform_indices = @transform_2, window_bounds = array<i64: 128, 256>}, {pipeline_mode = #tpu.pipeline_mode<synchronous>, transform_indices = @transform_3, window_bounds = array<i64: 1, 256>}, {pipeline_mode = #tpu.pipeline_mode<synchronous>, transform_indices = @transform_4, window_bounds = array<i64: 3, 256, 128>}, {pipeline_mode = #tpu.pipeline_mode<synchronous>, transform_indices = @transform_5, window_bounds = array<i64: 1, 128>}, {pipeline_mode = #tpu.pipeline_mode<synchronous>, transform_indices = @transform_6, window_bounds = array<i64: 128, 128>}, {pipeline_mode = #tpu.pipeline_mode<synchronous>, transform_indices = @transform_7, window_bounds = array<i64: 1, 128>}, {transform_indices = @transform_8, window_bounds = array<i64: 64, 128>}]} {
    %c0 = arith.constant 0 : index
    %c0_0 = arith.constant 0 : index
    %0 = vector.load %arg1[%c0, %c0_0] : memref<64x128xbf16, #tpu.memory_space<vmem>>, vector<64x128xbf16>
    %c0_1 = arith.constant 0 : index
    %c0_2 = arith.constant 0 : index
    %1 = vector.load %arg3[%c0_1, %c0_2] : memref<128x256xbf16, #tpu.memory_space<vmem>>, vector<128x256xbf16>
    %cst = arith.constant dense<0.000000e+00> : vector<64x256xf32>
    %2 = tpu.matmul %0, %1, %cst {dimension_numbers = #tpu.dot_dimension_numbers<[1], [0], [0], [1], [0, 0, 1, 1], [], []>} : vector<64x128xbf16>, vector<128x256xbf16>, vector<64x256xf32> -> vector<64x256xf32>
    %c0_3 = arith.constant 0 : index
    %c0_4 = arith.constant 0 : index
    %3 = vector.load %arg2[%c0_3, %c0_4] : memref<64x128xbf16, #tpu.memory_space<vmem>>, vector<64x128xbf16>
    %c0_5 = arith.constant 0 : index
    %c0_6 = arith.constant 0 : index
    %4 = vector.load %arg3[%c0_5, %c0_6] : memref<128x256xbf16, #tpu.memory_space<vmem>>, vector<128x256xbf16>
    %cst_7 = arith.constant dense<0.000000e+00> : vector<64x256xf32>
    %5 = tpu.matmul %3, %4, %cst_7 {dimension_numbers = #tpu.dot_dimension_numbers<[1], [0], [0], [1], [0, 0, 1, 1], [], []>} : vector<64x128xbf16>, vector<128x256xbf16>, vector<64x256xf32> -> vector<64x256xf32>
    %6 = arith.truncf %2 : vector<64x256xf32> to vector<64x256xbf16>
    %c0_8 = arith.constant 0 : index
    %c0_9 = arith.constant 0 : index
    %7 = vector.load %arg4[%c0_8, %c0_9] : memref<1x256xbf16, #tpu.memory_space<vmem>>, vector<1x256xbf16>
    %8 = vector.broadcast %7 : vector<1x256xbf16> to vector<64x256xbf16>
    %9 = arith.addf %6, %8 : vector<64x256xbf16>
    %cst_10 = arith.constant 0.000000e+00 : bf16
    %10 = vector.broadcast %cst_10 : bf16 to vector<64x256xbf16>
    %11 = arith.maximumf %9, %10 : vector<64x256xbf16>
    %12 = arith.truncf %5 : vector<64x256xf32> to vector<64x256xbf16>
    %c0_11 = arith.constant 0 : index
    %c0_12 = arith.constant 0 : index
    %13 = vector.load %arg4[%c0_11, %c0_12] : memref<1x256xbf16, #tpu.memory_space<vmem>>, vector<1x256xbf16>
    %14 = vector.broadcast %13 : vector<1x256xbf16> to vector<64x256xbf16>
    %15 = arith.addf %12, %14 : vector<64x256xbf16>
    %cst_13 = arith.constant 0.000000e+00 : bf16
    %16 = vector.broadcast %cst_13 : bf16 to vector<64x256xbf16>
    %17 = arith.maximumf %15, %16 : vector<64x256xbf16>
    %18 = arith.mulf %11, %17 : vector<64x256xbf16>
    %c0_14 = arith.constant 0 : index
    %c0_15 = arith.constant 0 : index
    %c0_16 = arith.constant 0 : index
    %19 = vector.load %arg5[%c0_14, %c0_15, %c0_16] : memref<3x256x128xbf16, #tpu.memory_space<vmem>>, vector<1x256x128xbf16>
    %20 = vector.shape_cast %19 : vector<1x256x128xbf16> to vector<256x128xbf16>
    %cst_17 = arith.constant dense<0.000000e+00> : vector<64x128xf32>
    %21 = tpu.matmul %11, %20, %cst_17 {dimension_numbers = #tpu.dot_dimension_numbers<[1], [0], [0], [1], [0, 0, 1, 1], [], []>} : vector<64x256xbf16>, vector<256x128xbf16>, vector<64x128xf32> -> vector<64x128xf32>
    %c1 = arith.constant 1 : index
    %c0_18 = arith.constant 0 : index
    %c0_19 = arith.constant 0 : index
    %22 = vector.load %arg5[%c1, %c0_18, %c0_19] : memref<3x256x128xbf16, #tpu.memory_space<vmem>>, vector<1x256x128xbf16>
    %23 = vector.shape_cast %22 : vector<1x256x128xbf16> to vector<256x128xbf16>
    %cst_20 = arith.constant dense<0.000000e+00> : vector<64x128xf32>
    %24 = tpu.matmul %18, %23, %cst_20 {dimension_numbers = #tpu.dot_dimension_numbers<[1], [0], [0], [1], [0, 0, 1, 1], [], []>} : vector<64x256xbf16>, vector<256x128xbf16>, vector<64x128xf32> -> vector<64x128xf32>
    %25 = arith.addf %21, %24 : vector<64x128xf32>
    %c2 = arith.constant 2 : index
    %c0_21 = arith.constant 0 : index
    %c0_22 = arith.constant 0 : index
    %26 = vector.load %arg5[%c2, %c0_21, %c0_22] : memref<3x256x128xbf16, #tpu.memory_space<vmem>>, vector<1x256x128xbf16>
    %27 = vector.shape_cast %26 : vector<1x256x128xbf16> to vector<256x128xbf16>
    %cst_23 = arith.constant dense<0.000000e+00> : vector<64x128xf32>
    %28 = tpu.matmul %17, %27, %cst_23 {dimension_numbers = #tpu.dot_dimension_numbers<[1], [0], [0], [1], [0, 0, 1, 1], [], []>} : vector<64x256xbf16>, vector<256x128xbf16>, vector<64x128xf32> -> vector<64x128xf32>
    %29 = arith.addf %25, %28 : vector<64x128xf32>
    %c0_24 = arith.constant 0 : index
    %c0_25 = arith.constant 0 : index
    %30 = vector.load %arg6[%c0_24, %c0_25] : memref<1x128xf32, #tpu.memory_space<vmem>>, vector<1x128xf32>
    %31 = vector.broadcast %30 : vector<1x128xf32> to vector<64x128xf32>
    %32 = arith.addf %29, %31 : vector<64x128xf32>
    %cst_26 = arith.constant 0.000000e+00 : f32
    %33 = vector.broadcast %cst_26 : f32 to vector<64x128xf32>
    %34 = arith.maximumf %32, %33 : vector<64x128xf32>
    %35 = arith.truncf %34 : vector<64x128xf32> to vector<64x128xbf16>
    %c0_27 = arith.constant 0 : index
    %c0_28 = arith.constant 0 : index
    %36 = vector.load %arg7[%c0_27, %c0_28] : memref<128x128xbf16, #tpu.memory_space<vmem>>, vector<128x128xbf16>
    %cst_29 = arith.constant dense<0.000000e+00> : vector<64x128xf32>
    %37 = tpu.matmul %35, %36, %cst_29 {dimension_numbers = #tpu.dot_dimension_numbers<[1], [0], [0], [1], [0, 0, 1, 1], [], []>} : vector<64x128xbf16>, vector<128x128xbf16>, vector<64x128xf32> -> vector<64x128xf32>
    %c0_30 = arith.constant 0 : index
    %c0_31 = arith.constant 0 : index
    %38 = vector.load %arg8[%c0_30, %c0_31] : memref<1x128xf32, #tpu.memory_space<vmem>>, vector<1x128xf32>
    %39 = vector.broadcast %38 : vector<1x128xf32> to vector<64x128xf32>
    %40 = arith.addf %37, %39 : vector<64x128xf32>
    %41 = arith.truncf %40 : vector<64x128xf32> to vector<64x128xbf16>
    %c0_32 = arith.constant 0 : index
    %c0_33 = arith.constant 0 : index
    %42 = vector.load %arg9[%c0_32, %c0_33] : memref<64x128xbf16, #tpu.memory_space<vmem>>, vector<64x128xbf16>
    tpu.vector_store %arg9[%c0_32, %c0_33], %41 {strides = array<i32>} : memref<64x128xbf16, #tpu.memory_space<vmem>>, vector<64x128xbf16>,
    return
  }
  func.func @transform_0(%arg0: i32) -> (i32, i32) {
    %c0_i32 = arith.constant 0 : i32
    %c0_i32_0 = arith.constant 0 : i32
    return %arg0, %c0_i32 : i32, i32
  }
  func.func @transform_1(%arg0: i32) -> (i32, i32) {
    %c0_i32 = arith.constant 0 : i32
    %c0_i32_0 = arith.constant 0 : i32
    return %arg0, %c0_i32 : i32, i32
  }
  func.func @transform_2(%arg0: i32) -> (i32, i32) {
    %c0_i32 = arith.constant 0 : i32
    %c0_i32_0 = arith.constant 0 : i32
    %c0_i32_1 = arith.constant 0 : i32
    return %c0_i32, %c0_i32_0 : i32, i32
  }
  func.func @transform_3(%arg0: i32) -> (i32, i32) {
    %c0_i32 = arith.constant 0 : i32
    %c0_i32_0 = arith.constant 0 : i32
    %c0_i32_1 = arith.constant 0 : i32
    return %c0_i32, %c0_i32_0 : i32, i32
  }
  func.func @transform_4(%arg0: i32) -> (i32, i32, i32) {
    %c0_i32 = arith.constant 0 : i32
    %c0_i32_0 = arith.constant 0 : i32
    %c0_i32_1 = arith.constant 0 : i32
    %c0_i32_2 = arith.constant 0 : i32
    return %c0_i32, %c0_i32_0, %c0_i32_1 : i32, i32, i32
  }
  func.func @transform_5(%arg0: i32) -> (i32, i32) {
    %c0_i32 = arith.constant 0 : i32
    %c0_i32_0 = arith.constant 0 : i32
    %c0_i32_1 = arith.constant 0 : i32
    return %c0_i32, %c0_i32_0 : i32, i32
  }
  func.func @transform_6(%arg0: i32) -> (i32, i32) {
    %c0_i32 = arith.constant 0 : i32
    %c0_i32_0 = arith.constant 0 : i32
    %c0_i32_1 = arith.constant 0 : i32
    return %c0_i32, %c0_i32_0 : i32, i32
  }
  func.func @transform_7(%arg0: i32) -> (i32, i32) {
    %c0_i32 = arith.constant 0 : i32
    %c0_i32_0 = arith.constant 0 : i32
    %c0_i32_1 = arith.constant 0 : i32
    return %c0_i32, %c0_i32_0 : i32, i32
  }
  func.func @transform_8(%arg0: i32) -> (i32, i32) {
    %c0_i32 = arith.constant 0 : i32
    %c0_i32_0 = arith.constant 0 : i32
    return %arg0, %c0_i32 : i32, i32
  }
}

</mosaic_0001>

<bundles_post_ra>
// kernel: fsm_comparenet.1
= control target key start
LH: loop header
LB: loop body
LE: loop exit
PB: predicated region body
PF: predicated region fallthrough
CT: control target
= control target key end

     0   :  { %s2100_s27 = smov 0   ;;  %s2422_s0 = inlined_call_operand.vmem [shape: bf16[256,128], index: 0, kind: input, shape index: {}]   ;;  %s2423_s1 = inlined_call_operand.vmem [shape: bf16[256,128], index: 1, kind: input, shape index: {}]   ;;  %s2424_s2 = inlined_call_operand.vmem [shape: bf16[128,256], index: 2, kind: input, shape index: {}]   ;;  %s2425_s3 = inlined_call_operand.vmem [shape: bf16[1,256], index: 3, kind: input, shape index: {}]   ;;  %s2426_s4 = inlined_call_operand.vmem [shape: bf16[3,256,128], index: 4, kind: input, shape index: {}]   ;;  %s2427_s5 = inlined_call_operand.vmem [shape: f32[1,128], index: 5, kind: input, shape index: {}]   ;;  %s2428_s6 = inlined_call_operand.vmem [shape: bf16[128,128], index: 6, kind: input, shape index: {}]   ;;  %s2429_s7 = inlined_call_operand.vmem [shape: f32[1,128], index: 7, kind: input, shape index: {}]   ;;  %s2430_s8 = inlined_call_operand.vmem [shape: bf16[256,128], index: 8, kind: output, shape index: {}]  }
   0x1 LB: > { %s1592_s28 = sadd.s32 4294967295, %s2051_s27   ;;  %p1596_p0 = scmp.ge.s32.totalorder %s2051_s27, 1  ;;  %s2051_s27 = sphi %s2100_s27, %s18_s27  }
   0x2   : > { %p274_p1 = scmp.lt.s32.totalorder %s2051_s27, 5 }
   0x4   : > { %p275_p2 = pnand %p1596_p0, %p274_p1 }
   0x5   : > { %v1957_v0 = vld [vmem:[%s2424_s2 + $0x4] ss:$8 sps:$4 sm:$0xff] (!%p275_p2)   ;;  %s1597_s9 = sshll.u32 (!%p275_p2), %s1592_s28, 3  ;;  %v1959_v1 = vld [vmem:[%s2424_s2] ss:$8 sps:$4 sm:$0xff] (!%p275_p2)   ;;  %v2053_v2 = vmov (!%p275_p2), 0   ;;  %v659_v60 = vlaneseq (!%p275_p2) }
   0x6   : > { %278 = sbr.rel (%p275_p2) target bundleno = 764 (0x2fc), region = 52  ;;  %492 = vmatprep.mubr.bf16.mxu0 (!%p275_p2), %v2053_v2  ;;  %597 = vmatprep.mubr.bf16.mxu1 (!%p275_p2), %v2053_v2  ;;  %p314_p3 = scmp.lt.s32.totalorder (!%p275_p2), %s1597_s9, 31  ;;  %v1960_v3 = vld [vmem:[%s2424_s2 + $0x14] ss:$8 sps:$4 sm:$0xff] (!%p275_p2)   ;;  %v1962_v4 = vld [vmem:[%s2424_s2 + $0x10] ss:$8 sps:$4 sm:$0xff] (!%p275_p2)  }
   0x7   : > { %460 = vmatprep.subr.bf16.mxu0 (!%p275_p2), %v1957_v0  ;;  %565 = vmatprep.subr.bf16.mxu1 (!%p275_p2), %v1957_v0  ;;  %v1963_v5 = vld [vmem:[%s2424_s2 + $0x24] ss:$8 sps:$4 sm:$0xff] (!%p275_p2)   ;;  %v1965_v6 = vld [vmem:[%s2424_s2 + $0x20] ss:$8 sps:$4 sm:$0xff] (!%p275_p2)   ;;  %v1966_v7 = vld [vmem:[%s2424_s2 + $0x34] ss:$8 sps:$4 sm:$0xff] (!%p275_p2)  }
   0x8   : > { %461 = vmatpush1.bf16.msra.mxu0 (!%p275_p2), %v1959_v1  ;;  %566 = vmatpush1.bf16.msra.mxu1 (!%p275_p2), %v1959_v1  ;;  %v1968_v8 = vld [vmem:[%s2424_s2 + $0x30] ss:$8 sps:$4 sm:$0xff] (!%p275_p2)   ;;  %v1969_v9 = vld [vmem:[%s2424_s2 + $0x44] ss:$8 sps:$4 sm:$0xff] (!%p275_p2)   ;;  %v1971_v10 = vld [vmem:[%s2424_s2 + $0x40] ss:$8 sps:$4 sm:$0xff] (!%p275_p2)  }
   0x9   : > { %462 = vmatprep.subr.bf16.mxu0 (!%p275_p2), %v1960_v3  ;;  %567 = vmatprep.subr.bf16.mxu1 (!%p275_p2), %v1960_v3  ;;  %v1972_v11 = vld [vmem:[%s2424_s2 + $0x54] ss:$8 sps:$4 sm:$0xff] (!%p275_p2)   ;;  %v1974_v12 = vld [vmem:[%s2424_s2 + $0x50] ss:$8 sps:$4 sm:$0xff] (!%p275_p2)   ;;  %v1975_v13 = vld [vmem:[%s2424_s2 + $0x64] ss:$8 sps:$4 sm:$0xff] (!%p275_p2)  }
   0xa   : > { %v1977_v14 = vld [vmem:[%s2424_s2 + $0x60] ss:$8 sps:$4 sm:$0xff] (!%p275_p2)   ;;  %v1978_v15 = vld [vmem:[%s2424_s2 + $0x74] ss:$8 sps:$4 sm:$0xff] (!%p275_p2)   ;;  %v1980_v16 = vld [vmem:[%s2424_s2 + $0x70] ss:$8 sps:$4 sm:$0xff] (!%p275_p2)  }
   0xb   : > { %v1989_v17 = vld [vmem:[%s2426_s4 + $0x40] sm:$0xff] (!%p275_p2)   ;;  %v1993_v23 = vld [vmem:[%s2426_s4 + $0x48] sm:$0xff] (!%p275_p2)   ;;  %v1997_v29 = vld [vmem:[%s2426_s4 + $0x50] sm:$0xff] (!%p275_p2)   ;;  %v2054_v58 = vmov (!%p275_p2), 1966171168   ;;  %v660_v62 = vshrl.u32 (!%p275_p2), %v659_v60, 7 }
   0xc   : > { %463 = vmatpush1.bf16.msra.mxu0 (!%p275_p2), %v1962_v4  ;;  %568 = vmatpush1.bf16.msra.mxu1 (!%p275_p2), %v1962_v4  ;;  %v1990_v19 = vld [vmem:[%s2426_s4 + $0xc0] sm:$0xff] (!%p275_p2)   ;;  %v1994_v24 = vld [vmem:[%s2426_s4 + $0xc8] sm:$0xff] (!%p275_p2)   ;;  %v1998_v30 = vld [vmem:[%s2426_s4 + $0xd0] sm:$0xff] (!%p275_p2)   ;;  %v657_v59 = vunpack.c.l.s4 (!%p275_p2), %v2054_v58 }
   0xd   : > { %s2432_s9 = smov (!%p314_p3, %s1597_s9), 31  ;;  %464 = vmatprep.subr.bf16.mxu0 %v1963_v5  ;;  %569 = vmatprep.subr.bf16.mxu1 %v1963_v5  ;;  %v1991_v21 = vld [vmem:[%s2426_s4] sm:$0xff]   ;;  %v1995_v25 = vld [vmem:[%s2426_s4 + $0x8] sm:$0xff]   ;;  %v1999_v31 = vld [vmem:[%s2426_s4 + $0x10] sm:$0xff]  }
   0xe   : > { %s2125_s18 = sshll.u32 %s2432_s9, 2  ;;  %v1992_v22 = vld [vmem:[%s2426_s4 + $0x80] sm:$0xff]   ;;  %v1996_v26 = vld [vmem:[%s2426_s4 + $0x88] sm:$0xff]   ;;  %v2000_v32 = vld [vmem:[%s2426_s4 + $0x90] sm:$0xff]   ;;  %v658_v61 = vunpack.c.0.s8 %v657_v59 }
   0xf   : > { %s2137_s25 = scalar_lea.vmem %s2422_s0, %s2125_s18  ;;  %s2143_s29 = scalar_lea.vmem %s2423_s1, %s2125_s18  ;;  %v2001_v33 = vld [vmem:[%s2426_s4 + $0x58] sm:$0xff]   ;;  %v2005_v37 = vld [vmem:[%s2426_s4 + $0x60] sm:$0xff]   ;;  %v2009_v43 = vld [vmem:[%s2426_s4 + $0x68] sm:$0xff]  }
  0x10   : > { %465 = vmatpush1.bf16.msra.mxu0 %v1965_v6  ;;  %570 = vmatpush1.bf16.msra.mxu1 %v1965_v6  ;;  %v1981_v18 = vld [vmem:[%s2137_s25] sm:$0xff]   ;;  %v1983_v27 = vld [vmem:[%s2137_s25 + $0x8] sm:$0xff]   ;;  %v2002_v34 = vld [vmem:[%s2426_s4 + $0xd8] sm:$0xff]   ;;  %v661_v0 = vsub.s32 %v658_v61, %v660_v62  ;;  %v675_v6 = vsub.s32 0, %v660_v62  ;;  %s329_s12 = scalar_lea.vmem %s2430_s8, %s2125_s18 }
  0x11   : > { %466 = vmatprep.subr.bf16.mxu0 %v1966_v7  ;;  %571 = vmatprep.subr.bf16.mxu1 %v1966_v7  ;;  %v1982_v20 = vld [vmem:[%s2143_s29] sm:$0xff]   ;;  %v1984_v28 = vld [vmem:[%s2143_s29 + $0x8] sm:$0xff]   ;;  %v2003_v35 = vld [vmem:[%s2426_s4 + $0x18] sm:$0xff]  }
  0x12   : > { %v2004_v36 = vld [vmem:[%s2426_s4 + $0x98] sm:$0xff]   ;;  %v2006_v38 = vld [vmem:[%s2426_s4 + $0xe0] sm:$0xff]   ;;  %v1985_v39 = vld [vmem:[%s2137_s25 + $0x10] sm:$0xff]  }
  0x13   : > { %v1986_v40 = vld [vmem:[%s2143_s29 + $0x10] sm:$0xff]   ;;  %v2007_v41 = vld [vmem:[%s2426_s4 + $0x20] sm:$0xff]   ;;  %v1987_v44 = vld [vmem:[%s2137_s25 + $0x18] sm:$0xff]  }
  0x14   : > { %467 = vmatpush1.bf16.msra.mxu0 %v1968_v8  ;;  %572 = vmatpush1.bf16.msra.mxu1 %v1968_v8  ;;  %v2008_v42 = vld [vmem:[%s2426_s4 + $0xa0] sm:$0xff]   ;;  %v1988_v45 = vld [vmem:[%s2143_s29 + $0x18] sm:$0xff]   ;;  %v2011_v46 = vld [vmem:[%s2426_s4 + $0x28] sm:$0xff]  }
  0x15   : > { %468 = vmatprep.subr.bf16.mxu0 %v1969_v9  ;;  %573 = vmatprep.subr.bf16.mxu1 %v1969_v9  ;;  %v2010_v47 = vld [vmem:[%s2426_s4 + $0xe8] sm:$0xff]   ;;  %v2013_v49 = vld [vmem:[%s2426_s4 + $0x70] sm:$0xff]   ;;  %v2017_v53 = vld [vmem:[%s2426_s4 + $0x78] sm:$0xff]  }
  0x16   : > { %v2012_v48 = vld [vmem:[%s2426_s4 + $0xa8] sm:$0xff]   ;;  %v2015_v50 = vld [vmem:[%s2426_s4 + $0x30] sm:$0xff]   ;;  %v2019_v54 = vld [vmem:[%s2426_s4 + $0x38] sm:$0xff]  }
  0x17   : > { %v2014_v51 = vld [vmem:[%s2426_s4 + $0xf0] sm:$0xff]   ;;  %v2018_v55 = vld [vmem:[%s2426_s4 + $0xf8] sm:$0xff]   ;;  %v2021_v57 = vld [vmem:[%s2426_s4 + $0x140] sm:$0xff]  }
  0x18   : > { %469 = vmatpush1.bf16.msra.mxu0 %v1971_v10  ;;  %574 = vmatpush1.bf16.msra.mxu1 %v1971_v10  ;;  %v2016_v52 = vld [vmem:[%s2426_s4 + $0xb0] sm:$0xff]   ;;  %v2020_v56 = vld [vmem:[%s2426_s4 + $0xb8] sm:$0xff]   ;;  %v1627_v63 = vld.sshfl [vmem:[%s2425_s3] sm:$0x11 pattern:$0x75316420] }
  0x19   : > { %470 = vmatprep.subr.bf16.mxu0 %v1972_v11  ;;  %575 = vmatprep.subr.bf16.mxu1 %v1972_v11  ;;  %v655_v1 = vcombine.high %v1627_v63, %v1627_v63  ;;  %v662_v3 = vrot.slane %v1627_v63, %v661_v0 }
  0x1b   : > { %v669_v4 = vrot.slane %v655_v1, %v661_v0  ;;  %v671_v5 = vpack.i.b16 %v662_v3, %v662_v3  ;;  %v2026_v0 = vld [vmem:[%s2426_s4 + $0x110] sm:$0xff]  }
  0x1c   : > { %471 = vmatpush1.bf16.msra.mxu0 %v1974_v12  ;;  %576 = vmatpush1.bf16.msra.mxu1 %v1974_v12 }
  0x1d   : > { %472 = vmatprep.subr.bf16.mxu0 %v1975_v13  ;;  %577 = vmatprep.subr.bf16.mxu1 %v1975_v13  ;;  %v678_v7 = vpack.i.b16 %v669_v4, %v669_v4  ;;  %v2288_v12 = vrot.slane %v671_v5, %v675_v6 }
  0x20   : > { %473 = vmatpush1.bf16.msra.mxu0 %v1977_v14  ;;  %578 = vmatpush1.bf16.msra.mxu1 %v1977_v14 }
  0x21   : > { %474 = vmatprep.subr.bf16.mxu0 %v1978_v15  ;;  %579 = vmatprep.subr.bf16.mxu1 %v1978_v15  ;;  %v2290_v15 = vrot.slane %v678_v7, %v675_v6  ;;  %v2027_v6 = vld [vmem:[%s2426_s4 + $0x158] sm:$0xff]  }
  0x24   : > { %475 = vmatpush1.bf16.msra.mxu0 %v1980_v16  ;;  %580 = vmatpush1.bf16.msra.mxu1 %v1980_v16 }
  0x25   : > { %1831 = vmatprep.subr.bf16.mxu1 %v1989_v17  ;;  %1791 = vmatprep.subr.bf16.mxu0 %v1990_v19 }
  0x27   : > { %493 = vmatmul.mubr.bf16.vlgmr.msra.gmra.mrb[0].mxu0 %v1981_v18  ;;  %598 = vmatmul.mubr.bf16.vlgmr.msra.gmra.mrb[0].mxu1 %v1982_v20 }
  0x28   : > { %502 = vmatprep.mubr.bf16.mxu0 %v2053_v2  ;;  %607 = vmatprep.mubr.bf16.mxu1 %v2053_v2 }
  0x29   : > { %1832 = vmatpush3.bf16.msra.mxu1 %v1991_v21  ;;  %1792 = vmatpush3.bf16.msra.mxu0 %v1992_v22 }
  0x2a   : > { %1833 = vmatprep.subr.bf16.mxu1 %v1993_v23  ;;  %1793 = vmatprep.subr.bf16.mxu0 %v1994_v24 }
  0x2d   : > { %1834 = vmatpush3.bf16.msra.mxu1 %v1995_v25  ;;  %1794 = vmatpush3.bf16.msra.mxu0 %v1996_v26 }
  0x2e   : > { %1835 = vmatprep.subr.bf16.mxu1 %v1997_v29  ;;  %1795 = vmatprep.subr.bf16.mxu0 %v1998_v30 }
  0x2f   : > { %503 = vmatmul.mubr.bf16.gmra.mrb[4].mxu0 %v1983_v27  ;;  %608 = vmatmul.mubr.bf16.gmra.mrb[4].mxu1 %v1984_v28 }
  0x30   : > { %512 = vmatprep.mubr.bf16.mxu0 %v2053_v2  ;;  %617 = vmatprep.mubr.bf16.mxu1 %v2053_v2 }
  0x31   : > { %1836 = vmatpush3.bf16.msra.mxu1 %v1999_v31  ;;  %1796 = vmatpush3.bf16.msra.mxu0 %v2000_v32 }
  0x32   : > { %1837 = vmatprep.subr.bf16.mxu1 %v2001_v33  ;;  %1797 = vmatprep.subr.bf16.mxu0 %v2002_v34 }
  0x35   : > { %1838 = vmatpush3.bf16.msra.mxu1 %v2003_v35  ;;  %1798 = vmatpush3.bf16.msra.mxu0 %v2004_v36 }
  0x36   : > { %1839 = vmatprep.subr.bf16.mxu1 %v2005_v37  ;;  %1799 = vmatprep.subr.bf16.mxu0 %v2006_v38  ;;  %v2022_v38 = vld [vmem:[%s2426_s4 + $0x100] sm:$0xff]  }
  0x37   : > { %513 = vmatmul.mubr.bf16.gmra.mrb[8].mxu0 %v1985_v39  ;;  %618 = vmatmul.mubr.bf16.gmra.mrb[8].mxu1 %v1986_v40 }
  0x38   : > { %522 = vmatprep.mubr.bf16.mxu0 %v2053_v2  ;;  %627 = vmatprep.mubr.bf16.mxu1 %v2053_v2 }
  0x39   : > { %1840 = vmatpush3.bf16.msra.mxu1 %v2007_v41  ;;  %1800 = vmatpush3.bf16.msra.mxu0 %v2008_v42 }
  0x3a   : > { %1841 = vmatprep.subr.bf16.mxu1 %v2009_v43  ;;  %1801 = vmatprep.subr.bf16.mxu0 %v2010_v47  ;;  %v2023_v43 = vld [vmem:[%s2426_s4 + $0x148] sm:$0xff]  }
  0x3d   : > { %1842 = vmatpush3.bf16.msra.mxu1 %v2011_v46  ;;  %1802 = vmatpush3.bf16.msra.mxu0 %v2012_v48 }
  0x3e   : > { %1843 = vmatprep.subr.bf16.mxu1 %v2013_v49  ;;  %1803 = vmatprep.subr.bf16.mxu0 %v2014_v51 }
  0x3f   : > { %523 = vmatmul.mubr.bf16.gmra.mrb[12].mxu0 %v1987_v44  ;;  %628 = vmatmul.mubr.bf16.gmra.mrb[12].mxu1 %v1988_v45 }
  0x41   : > { %1844 = vmatpush3.bf16.msra.mxu1 %v2015_v50  ;;  %1804 = vmatpush3.bf16.msra.mxu0 %v2016_v52  ;;  %v2024_v50 = vld [vmem:[%s2426_s4 + $0x108] sm:$0xff]  }
  0x42   : > { %1845 = vmatprep.subr.bf16.mxu1 %v2017_v53  ;;  %1805 = vmatprep.subr.bf16.mxu0 %v2018_v55  ;;  %v2025_v53 = vld [vmem:[%s2426_s4 + $0x150] sm:$0xff]  }
  0x45   : > { %1846 = vmatpush3.bf16.msra.mxu1 %v2019_v54  ;;  %1806 = vmatpush3.bf16.msra.mxu0 %v2020_v56 }
  0x46   : > { %1871 = vmatprep.subr.bf16.mxu0 %v2021_v57 }
  0xfa   : > { %v494_v8 = vpop.f32.mrb[0].mxu0  ;;  %v599_v9 = vpop.f32.mrb[0].mxu1 }
  0xfb   : > { %v496_v10 = vpop.f32.mrb[1].mxu0  ;;  %v601_v11 = vpop.f32.mrb[1].mxu1 }
  0xfc   : > { %v498_v13 = vpop.f32.mrb[2].mxu0  ;;  %v603_v14 = vpop.f32.mrb[2].mxu1 }
  0xfd   : > { %v638_v16 = vpack.c.bf16 %v498_v13, %v494_v8  ;;  %v700_v17 = vpack.c.bf16 %v603_v14, %v599_v9  ;;  %v500_v18 = vpop.f32.mrb[3].mxu0  ;;  %v605_v19 = vpop.f32.mrb[3].mxu1  ;;  %v2028_v14 = vld [vmem:[%s2426_s4 + $0x118] sm:$0xff]  }
  0xfe   : > { %v639_v20 = vpack.c.bf16 %v500_v18, %v496_v10  ;;  %v701_v21 = vpack.c.bf16 %v605_v19, %v601_v11  ;;  %v2029_v18 = vld [vmem:[%s2426_s4 + $0x160] sm:$0xff]  }
  0xff   : > { %v684_v22 = vadd.bf16 %v2288_v12, %v638_v16  ;;  %v708_v23 = vadd.bf16 %v700_v17, %v2288_v12 }
 0x100   : > { %v685_v24 = vadd.bf16 %v2290_v15, %v639_v20  ;;  %v709_v25 = vadd.bf16 %v701_v21, %v2290_v15 }
 0x101   : > { %v692_v26 = vmax.bf16 %v2053_v2, %v684_v22  ;;  %v2298_v27 = vmax.bf16 %v2053_v2, %v708_v23 }
 0x102   : > { %v2301_v28 = vmax.bf16 %v2053_v2, %v709_v25  ;;  %v504_v29 = vpop.f32.mrb[4].mxu0  ;;  %v609_v30 = vpop.f32.mrb[4].mxu1  ;;  %v693_v31 = vmax.bf16 %v2053_v2, %v685_v24 }
 0x103   : > { %v724_v32 = vmul.bf16 %v2298_v27, %v692_v26  ;;  %v506_v33 = vpop.f32.mrb[5].mxu0  ;;  %v611_v34 = vpop.f32.mrb[5].mxu1 }
 0x104   : > { %v508_v35 = vpop.f32.mrb[6].mxu0  ;;  %v613_v36 = vpop.f32.mrb[6].mxu1  ;;  %1086 = vmatprep.mubr.bf16.mxu1 %v693_v31  ;;  %v725_v37 = vmul.bf16 %v2301_v28, %v693_v31  ;;  %v2030_v31 = vld [vmem:[%s2426_s4 + $0x120] sm:$0xff]  }
 0x105   : > { %v640_v39 = vpack.c.bf16 %v508_v35, %v504_v29  ;;  %v702_v40 = vpack.c.bf16 %v613_v36, %v609_v30  ;;  %v510_v41 = vpop.f32.mrb[7].mxu0  ;;  %v615_v42 = vpop.f32.mrb[7].mxu1  ;;  %1087 = vmatmul.mubr.bf16.vlgmr.msra.gmra.mrb[16].mxu1 %v692_v26  ;;  %v2031_v36 = vld [vmem:[%s2426_s4 + $0x168] sm:$0xff]  }
 0x106   : > { %v641_v44 = vpack.c.bf16 %v510_v41, %v506_v33  ;;  %v703_v45 = vpack.c.bf16 %v615_v42, %v611_v34  ;;  %925 = vmatprep.mubr.bf16.mxu0 %v725_v37 }
 0x107   : > { %v686_v46 = vadd.bf16 %v2288_v12, %v640_v39  ;;  %v710_v47 = vadd.bf16 %v702_v40, %v2288_v12  ;;  %926 = vmatmul.mubr.bf16.vlgmr.msra.gmra.mrb[16].mxu0 %v724_v32 }
 0x108   : > { %v687_v48 = vadd.bf16 %v2290_v15, %v641_v44  ;;  %v711_v49 = vadd.bf16 %v703_v45, %v2290_v15  ;;  %1872 = vmatpush3.bf16.msra.mxu0 %v2022_v38 }
 0x109   : > { %v2320_v51 = vmax.bf16 %v2053_v2, %v710_v47  ;;  %1873 = vmatprep.subr.bf16.mxu0 %v2023_v43  ;;  %v694_v52 = vmax.bf16 %v2053_v2, %v686_v46  ;;  %v2032_v43 = vld [vmem:[%s2426_s4 + $0x128] sm:$0xff]   ;;  %v2033_v46 = vld [vmem:[%s2426_s4 + $0x170] sm:$0xff]  }
 0x10a   : > { %v2327_v54 = vmax.bf16 %v2053_v2, %v711_v49  ;;  %v514_v55 = vpop.f32.mrb[8].mxu0  ;;  %v619_v56 = vpop.f32.mrb[8].mxu1  ;;  %v695_v57 = vmax.bf16 %v2053_v2, %v687_v48  ;;  %v2034_v49 = vld [vmem:[%s2426_s4 + $0x130] sm:$0xff]  }
 0x10b   : > { %v516_v58 = vpop.f32.mrb[9].mxu0  ;;  %v621_v59 = vpop.f32.mrb[9].mxu1  ;;  %v726_v60 = vmul.bf16 %v2320_v51, %v694_v52 }
 0x10c   : > { %1874 = vmatpush3.bf16.msra.mxu0 %v2024_v50  ;;  %v518_v61 = vpop.f32.mrb[10].mxu0  ;;  %v623_v62 = vpop.f32.mrb[10].mxu1  ;;  %1094 = vmatprep.mubr.bf16.mxu1 %v695_v57  ;;  %v727_v63 = vmul.bf16 %v2327_v54, %v695_v57  ;;  %v2035_v50 = vld [vmem:[%s2426_s4 + $0x178] sm:$0xff]  }
 0x10d   : > { %v642_v1 = vpack.c.bf16 %v518_v61, %v514_v55  ;;  %v704_v3 = vpack.c.bf16 %v623_v62, %v619_v56  ;;  %v520_v4 = vpop.f32.mrb[11].mxu0  ;;  %v625_v5 = vpop.f32.mrb[11].mxu1  ;;  %1095 = vmatmul.mubr.bf16.gmra.mrb[20].mxu1 %v694_v52  ;;  %1875 = vmatprep.subr.bf16.mxu0 %v2025_v53  ;;  %v2038_v52 = vld [vmem:[%s2428_s6 + $0x8] sm:$0xff]   ;;  %v2041_v53 = vld [vmem:[%s2428_s6 + $0x20] sm:$0xff]   ;;  %v2043_v55 = vld [vmem:[%s2428_s6 + $0x30] sm:$0xff]  }
 0x10e   : > { %v643_v7 = vpack.c.bf16 %v520_v4, %v516_v58  ;;  %v705_v8 = vpack.c.bf16 %v625_v5, %v621_v59  ;;  %933 = vmatprep.mubr.bf16.mxu0 %v727_v63  ;;  %v2044_v56 = vld [vmem:[%s2428_s6 + $0x38] sm:$0xff]  }
 0x10f   : > { %v688_v9 = vadd.bf16 %v2288_v12, %v642_v1  ;;  %v712_v10 = vadd.bf16 %v704_v3, %v2288_v12  ;;  %934 = vmatmul.mubr.bf16.gmra.mrb[20].mxu0 %v726_v60 }
 0x110   : > { %v689_v11 = vadd.bf16 %v2290_v15, %v643_v7  ;;  %v713_v13 = vadd.bf16 %v705_v8, %v2290_v15  ;;  %1876 = vmatpush3.bf16.msra.mxu0 %v2026_v0 }
 0x111   : > { %v720_v16 = vmax.bf16 %v2053_v2, %v712_v10  ;;  %1877 = vmatprep.subr.bf16.mxu0 %v2027_v6  ;;  %v696_v17 = vmax.bf16 %v2053_v2, %v688_v9 }
 0x112   : > { %v721_v19 = vmax.bf16 %v2053_v2, %v713_v13  ;;  %v524_v20 = vpop.f32.mrb[12].mxu0  ;;  %v629_v21 = vpop.f32.mrb[12].mxu1  ;;  %v697_v22 = vmax.bf16 %v2053_v2, %v689_v11 }
 0x113   : > { %v526_v23 = vpop.f32.mrb[13].mxu0  ;;  %v631_v24 = vpop.f32.mrb[13].mxu1  ;;  %v728_v25 = vmul.bf16 %v720_v16, %v696_v17 }
 0x114   : > { %1878 = vmatpush3.bf16.msra.mxu0 %v2028_v14  ;;  %v528_v26 = vpop.f32.mrb[14].mxu0  ;;  %v633_v29 = vpop.f32.mrb[14].mxu1  ;;  %1102 = vmatprep.mubr.bf16.mxu1 %v697_v22  ;;  %v729_v30 = vmul.bf16 %v721_v19, %v697_v22 }
 0x115   : > { %v644_v32 = vpack.c.bf16 %v528_v26, %v524_v20  ;;  %v706_v33 = vpack.c.bf16 %v633_v29, %v629_v21  ;;  %v530_v34 = vpop.f32.mrb[15].mxu0  ;;  %v635_v35 = vpop.f32.mrb[15].mxu1  ;;  %1103 = vmatmul.mubr.bf16.gmra.mrb[24].mxu1 %v696_v17  ;;  %1879 = vmatprep.subr.bf16.mxu0 %v2029_v18 }
 0x116   : > { %v645_v37 = vpack.c.bf16 %v530_v34, %v526_v23  ;;  %v707_v38 = vpack.c.bf16 %v635_v35, %v631_v24  ;;  %941 = vmatprep.mubr.bf16.mxu0 %v729_v30 }
 0x117   : > { %v690_v39 = vadd.bf16 %v2288_v12, %v644_v32  ;;  %v714_v40 = vadd.bf16 %v706_v33, %v2288_v12  ;;  %942 = vmatmul.mubr.bf16.gmra.mrb[24].mxu0 %v728_v25 }
 0x118   : > { %v691_v41 = vadd.bf16 %v2290_v15, %v645_v37  ;;  %v715_v42 = vadd.bf16 %v707_v38, %v2290_v15  ;;  %1880 = vmatpush3.bf16.msra.mxu0 %v2030_v31 }
 0x119   : > { %v722_v44 = vmax.bf16 %v2053_v2, %v714_v40  ;;  %1881 = vmatprep.subr.bf16.mxu0 %v2031_v36  ;;  %v698_v45 = vmax.bf16 %v2053_v2, %v690_v39 }
 0x11a   : > { %v723_v12 = vmax.bf16 %v2053_v2, %v715_v42  ;;  %v699_v47 = vmax.bf16 %v2053_v2, %v691_v41  ;;  %v2036_v2 = vld [vmem:[%s2426_s4 + $0x138] sm:$0xff]  }
 0x11b   : > { %v730_v48 = vmul.bf16 %v722_v44, %v698_v45 }
 0x11c   : > { %1882 = vmatpush3.bf16.msra.mxu0 %v2032_v43  ;;  %1110 = vmatprep.mubr.bf16.mxu1 %v699_v47  ;;  %v731_v15 = vmul.bf16 %v723_v12, %v699_v47 }
 0x11d   : > { %1111 = vmatmul.mubr.bf16.gmra.mrb[28].mxu1 %v698_v45  ;;  %1883 = vmatprep.subr.bf16.mxu0 %v2033_v46 }
 0x11e   : > { %949 = vmatprep.mubr.bf16.mxu0 %v731_v15 }
 0x11f   : > { %950 = vmatmul.mubr.bf16.gmra.mrb[28].mxu0 %v730_v48 }
 0x120   : > { %1884 = vmatpush3.bf16.msra.mxu0 %v2034_v49  ;;  %1280 = vmatprep.mubr.bf16.mxu0 %v2301_v28  ;;  %v2037_v28 = vld [vmem:[%s2428_s6] sm:$0xff]  }
 0x121   : > { %1885 = vmatprep.subr.bf16.mxu0 %v2035_v50  ;;  %1923 = vmatprep.subr.bf16.mxu1 %v2037_v28 }
 0x122   : > { %1924 = vmatpush3.bf16.msra.mxu1 %v2037_v28 }
 0x123   : > { %1925 = vmatprep.subr.bf16.mxu1 %v2038_v52 }
 0x124   : > { %1886 = vmatpush3.bf16.msra.mxu0 %v2036_v2 }
 0x126   : > { %1926 = vmatpush3.bf16.msra.mxu1 %v2038_v52 }
 0x127   : > { %1281 = vmatmul.mubr.bf16.vlgmr.msra.gmra.mrb[32].mxu0 %v2298_v27  ;;  %v2039_v27 = vld [vmem:[%s2428_s6 + $0x10] sm:$0xff]  }
 0x128   : > { %1288 = vmatprep.mubr.bf16.mxu0 %v2327_v54  ;;  %1927 = vmatprep.subr.bf16.mxu1 %v2039_v27  ;;  %v2042_v54 = vld [vmem:[%s2428_s6 + $0x28] sm:$0xff]  }
 0x12a   : > { %1928 = vmatpush3.bf16.msra.mxu1 %v2039_v27 }
 0x12f   : > { %1289 = vmatmul.mubr.bf16.gmra.mrb[36].mxu0 %v2320_v51  ;;  %v2040_v51 = vld [vmem:[%s2428_s6 + $0x18] sm:$0xff]  }
 0x130   : > { %1296 = vmatprep.mubr.bf16.mxu0 %v721_v19  ;;  %1929 = vmatprep.subr.bf16.mxu1 %v2040_v51 }
 0x131   : > { %1930 = vmatpush3.bf16.msra.mxu1 %v2040_v51 }
 0x132   : > { %1931 = vmatprep.subr.bf16.mxu1 %v2041_v53 }
 0x135   : > { %1932 = vmatpush3.bf16.msra.mxu1 %v2041_v53  ;;  %v1740_v53 = vld [vmem:[%s2427_s5] ss:$0 sm:$0xff] }
 0x136   : > { %1933 = vmatprep.subr.bf16.mxu1 %v2042_v54 }
 0x137   : > { %1297 = vmatmul.mubr.bf16.gmra.mrb[40].mxu0 %v720_v16 }
 0x138   : > { %1304 = vmatprep.mubr.bf16.mxu0 %v723_v12 }
 0x139   : > { %1934 = vmatpush3.bf16.msra.mxu1 %v2042_v54 }
 0x13a   : > { %1935 = vmatprep.subr.bf16.mxu1 %v2043_v55 }
 0x13d   : > { %1936 = vmatpush3.bf16.msra.mxu1 %v2043_v55 }
 0x13e   : > { %1937 = vmatprep.subr.bf16.mxu1 %v2044_v56 }
 0x13f   : > { %1305 = vmatmul.mubr.bf16.gmra.mrb[44].mxu0 %v722_v44 }
 0x141   : > { %1938 = vmatpush3.bf16.msra.mxu1 %v2044_v56 }
 0x1d8   : > { %v1847_v57 = vpop.f32.mrb[16].mxu1 }
 0x1d9   : > { %v1848_v58 = vpop.f32.mrb[17].mxu1 }
 0x1da   : > { %v1849_v59 = vadd.f32 %v1848_v58, %v1847_v57  ;;  %v1807_v60 = vpop.f32.mrb[16].mxu0  ;;  %v1850_v61 = vpop.f32.mrb[18].mxu1 }
 0x1db   : > { %v1808_v62 = vpop.f32.mrb[17].mxu0  ;;  %v1851_v63 = vpop.f32.mrb[19].mxu1 }
 0x1dc   : > { %v1809_v0 = vadd.f32 %v1808_v62, %v1807_v60  ;;  %v1852_v1 = vadd.f32 %v1851_v63, %v1850_v61  ;;  %v1810_v3 = vpop.f32.mrb[18].mxu0 }
 0x1dd   : > { %v1811_v4 = vpop.f32.mrb[19].mxu0 }
 0x1de   : > { %v1089_v5 = vadd.f32 %v1849_v59, %v1809_v0  ;;  %v1812_v6 = vadd.f32 %v1811_v4, %v1810_v3 }
 0x1e0   : > { %v1092_v7 = vadd.f32 %v1852_v1, %v1812_v6  ;;  %v1853_v8 = vpop.f32.mrb[20].mxu1 }
 0x1e1   : > { %v1854_v9 = vpop.f32.mrb[21].mxu1 }
 0x1e2   : > { %v1855_v10 = vadd.f32 %v1854_v9, %v1853_v8  ;;  %v1813_v11 = vpop.f32.mrb[20].mxu0  ;;  %v1856_v13 = vpop.f32.mrb[22].mxu1 }
 0x1e3   : > { %v1814_v14 = vpop.f32.mrb[21].mxu0  ;;  %v1857_v16 = vpop.f32.mrb[23].mxu1 }
 0x1e4   : > { %v1815_v17 = vadd.f32 %v1814_v14, %v1813_v11  ;;  %v1858_v18 = vadd.f32 %v1857_v16, %v1856_v13  ;;  %v1816_v19 = vpop.f32.mrb[22].mxu0 }
 0x1e5   : > { %v1817_v20 = vpop.f32.mrb[23].mxu0 }
 0x1e6   : > { %v1097_v21 = vadd.f32 %v1855_v10, %v1815_v17  ;;  %v1818_v22 = vadd.f32 %v1817_v20, %v1816_v19 }
 0x1e8   : > { %v1100_v23 = vadd.f32 %v1858_v18, %v1818_v22  ;;  %v1859_v24 = vpop.f32.mrb[24].mxu1 }
 0x1e9   : > { %v1860_v25 = vpop.f32.mrb[25].mxu1 }
 0x1ea   : > { %v1861_v26 = vadd.f32 %v1860_v25, %v1859_v24  ;;  %v1819_v29 = vpop.f32.mrb[24].mxu0  ;;  %v1862_v30 = vpop.f32.mrb[26].mxu1 }
 0x1eb   : > { %v1820_v31 = vpop.f32.mrb[25].mxu0  ;;  %v1863_v32 = vpop.f32.mrb[27].mxu1 }
 0x1ec   : > { %v1821_v33 = vadd.f32 %v1820_v31, %v1819_v29  ;;  %v1864_v34 = vadd.f32 %v1863_v32, %v1862_v30  ;;  %v1822_v35 = vpop.f32.mrb[26].mxu0 }
 0x1ed   : > { %v1823_v36 = vpop.f32.mrb[27].mxu0 }
 0x1ee   : > { %v1105_v37 = vadd.f32 %v1861_v26, %v1821_v33  ;;  %v1824_v38 = vadd.f32 %v1823_v36, %v1822_v35 }
 0x1f0   : > { %v1108_v39 = vadd.f32 %v1864_v34, %v1824_v38  ;;  %v1865_v40 = vpop.f32.mrb[28].mxu1 }
 0x1f1   : > { %v1866_v41 = vpop.f32.mrb[29].mxu1 }
 0x1f2   : > { %v1867_v42 = vadd.f32 %v1866_v41, %v1865_v40  ;;  %v1825_v43 = vpop.f32.mrb[28].mxu0  ;;  %v1868_v44 = vpop.f32.mrb[30].mxu1 }
 0x1f3   : > { %v1826_v45 = vpop.f32.mrb[29].mxu0  ;;  %v1869_v46 = vpop.f32.mrb[31].mxu1 }
 0x1f4   : > { %v1827_v12 = vadd.f32 %v1826_v45, %v1825_v43  ;;  %v1870_v47 = vadd.f32 %v1869_v46, %v1868_v44  ;;  %v1828_v48 = vpop.f32.mrb[30].mxu0  ;;  %v1741_v44 = vld [vmem:[%s2429_s7] ss:$0 sm:$0xff] }
 0x1f5   : > { %v1829_v15 = vpop.f32.mrb[31].mxu0 }
 0x1f6   : > { %v1113_v49 = vadd.f32 %v1867_v42, %v1827_v12  ;;  %v1830_v50 = vadd.f32 %v1829_v15, %v1828_v48 }
 0x1f8   : > { %v1116_v2 = vadd.f32 %v1870_v47, %v1830_v50 }
 0x1fa   : > { %v1887_v28 = vpop.f32.mrb[32].mxu0 }
 0x1fb   : > { %v1888_v52 = vpop.f32.mrb[33].mxu0 }
 0x1fc   : > { %v1889_v27 = vadd.f32 %v1888_v52, %v1887_v28  ;;  %v1890_v51 = vpop.f32.mrb[34].mxu0 }
 0x1fd   : > { %v1891_v54 = vpop.f32.mrb[35].mxu0 }
 0x1fe   : > { %v1313_v55 = vadd.f32 %v1889_v27, %v1089_v5  ;;  %v1892_v56 = vadd.f32 %v1891_v54, %v1890_v51 }
 0x200   : > { %v1328_v57 = vadd.f32 %v1740_v53, %v1313_v55  ;;  %v1314_v58 = vadd.f32 %v1892_v56, %v1092_v7 }
 0x202   : > { %v1329_v59 = vadd.f32 %v1740_v53, %v1314_v58  ;;  %v1893_v60 = vpop.f32.mrb[36].mxu0  ;;  %v1336_v62 = vmax.f32 %v1328_v57, 0.0 }
 0x203   : > { %v1894_v61 = vpop.f32.mrb[37].mxu0 }
 0x204   : > { %v1337_v63 = vmax.f32 %v1329_v59, 0.0  ;;  %v1895_v0 = vadd.f32 %v1894_v61, %v1893_v60  ;;  %v1896_v1 = vpop.f32.mrb[38].mxu0 }
 0x205   : > { %v1897_v3 = vpop.f32.mrb[39].mxu0 }
 0x206   : > { %v1315_v4 = vadd.f32 %v1895_v0, %v1097_v21  ;;  %v1898_v6 = vadd.f32 %v1897_v3, %v1896_v1  ;;  %v1344_v8 = vpack.c.bf16 %v1337_v63, %v1336_v62 }
 0x208   : > { %v1330_v9 = vadd.f32 %v1740_v53, %v1315_v4  ;;  %v1316_v10 = vadd.f32 %v1898_v6, %v1100_v23  ;;  %1939 = vmatprep.mubr.bf16.mxu1 %v1344_v8 }
 0x20a   : > { %v1331_v11 = vadd.f32 %v1740_v53, %v1316_v10  ;;  %v1899_v13 = vpop.f32.mrb[40].mxu0  ;;  %v1338_v14 = vmax.f32 %v1330_v9, 0.0 }
 0x20b   : > { %v1900_v5 = vpop.f32.mrb[41].mxu0 }
 0x20c   : > { %v1339_v16 = vmax.f32 %v1331_v11, 0.0  ;;  %v1901_v7 = vadd.f32 %v1900_v5, %v1899_v13  ;;  %v1902_v17 = vpop.f32.mrb[42].mxu0 }
 0x20d   : > { %v1903_v18 = vpop.f32.mrb[43].mxu0 }
 0x20e   : > { %v1345_v19 = vpack.c.bf16 %v1339_v16, %v1338_v14  ;;  %v1317_v20 = vadd.f32 %v1901_v7, %v1105_v37  ;;  %v1904_v22 = vadd.f32 %v1903_v18, %v1902_v17 }
 0x210   : > { %v1332_v24 = vadd.f32 %v1740_v53, %v1317_v20  ;;  %v1318_v25 = vadd.f32 %v1904_v22, %v1108_v39  ;;  %1940 = vmatmul.mubr.bf16.vlgmr.msra.gmra.mrb[32].mxu1 %v1345_v19 }
 0x212   : > { %v1333_v21 = vadd.f32 %v1740_v53, %v1318_v25  ;;  %v1905_v26 = vpop.f32.mrb[44].mxu0  ;;  %v1340_v30 = vmax.f32 %v1332_v24, 0.0 }
 0x213   : > { %v1906_v29 = vpop.f32.mrb[45].mxu0 }
 0x214   : > { %v1341_v23 = vmax.f32 %v1333_v21, 0.0  ;;  %v1907_v31 = vadd.f32 %v1906_v29, %v1905_v26  ;;  %v1908_v32 = vpop.f32.mrb[46].mxu0 }
 0x215   : > { %v1909_v33 = vpop.f32.mrb[47].mxu0 }
 0x216   : > { %v1319_v34 = vadd.f32 %v1907_v31, %v1113_v49  ;;  %v1910_v35 = vadd.f32 %v1909_v33, %v1908_v32  ;;  %v1346_v36 = vpack.c.bf16 %v1341_v23, %v1340_v30 }
 0x218   : > { %v1334_v38 = vadd.f32 %v1740_v53, %v1319_v34  ;;  %v1320_v40 = vadd.f32 %v1910_v35, %v1116_v2  ;;  %1943 = vmatprep.mubr.bf16.mxu1 %v1346_v36 }
 0x21a   : > { %v1335_v37 = vadd.f32 %v1740_v53, %v1320_v40  ;;  %v1342_v41 = vmax.f32 %v1334_v38, 0.0 }
 0x21c   : > { %v1343_v42 = vmax.f32 %v1335_v37, 0.0 }
 0x21e   : > { %v1347_v39 = vpack.c.bf16 %v1343_v42, %v1342_v41 }
 0x220   : > { %1944 = vmatmul.mubr.bf16.gmra.mrb[36].mxu1 %v1347_v39 }
 0x2e3   : > { %v1941_v43 = vpop.f32.mrb[32].mxu1 }
 0x2e4   : > { %v1453_v45 = vpop.f32.mrb[33].mxu1  ;;  %v1462_v12 = vadd.f32 %v1941_v43, %v1741_v44 }
 0x2e5   : > { %v1942_v46 = vpop.f32.mrb[34].mxu1  ;;  %v1454_v15 = vadd.f32 %v1741_v44, %v1453_v45 }
 0x2e6   : > { %v1465_v47 = vadd.f32 %v1942_v46, %v1741_v44  ;;  %v1456_v48 = vpop.f32.mrb[35].mxu1 }
 0x2e7   : > { %v1457_v49 = vadd.f32 %v1741_v44, %v1456_v48 }
 0x2e8   : > { %v1776_v50 = vpack.c.bf16 %v1465_v47, %v1462_v12 }
 0x2e9   : > { %v1771_v2 = vpack.c.bf16 %v1457_v49, %v1454_v15 }
 0x2ea   : > { %1788 = vst [vmem:[%s329_s12 + $0x8] sm:$0xff] %v1776_v50  }
 0x2eb   : > { %1772 = vst [vmem:[%s329_s12] sm:$0xff] %v1771_v2  }
 0x2f3   : > { %v1945_v28 = vpop.f32.mrb[36].mxu1 }
 0x2f4   : > { %v1469_v52 = vpop.f32.mrb[37].mxu1  ;;  %v1478_v51 = vadd.f32 %v1945_v28, %v1741_v44 }
 0x2f5   : > { %v1946_v27 = vpop.f32.mrb[38].mxu1  ;;  %v1470_v55 = vadd.f32 %v1741_v44, %v1469_v52 }
 0x2f6   : > { %v1481_v53 = vadd.f32 %v1946_v27, %v1741_v44  ;;  %v1472_v54 = vpop.f32.mrb[39].mxu1 }
 0x2f7   : > { %v1473_v56 = vadd.f32 %v1741_v44, %v1472_v54 }
 0x2f8   : > { %v1786_v57 = vpack.c.bf16 %v1481_v53, %v1478_v51 }
 0x2f9   : > { %v1781_v58 = vpack.c.bf16 %v1473_v56, %v1470_v55 }
 0x2fa   : > { %1790 = vst [vmem:[%s329_s12 + $0x18] sm:$0xff] %v1786_v57  }
 0x2fb   : > { %1789 = vst [vmem:[%s329_s12 + $0x10] sm:$0xff] %v1781_v58  }
 0x2fc PF: > { %s18_s27 = sadd.s32 1, %s2051_s27  }
 0x2fd   : > { %p15_p4 = scmp.ge.s32.totalorder %s18_s27, 6  }
 0x2ff   :  { %17 = sbr.rel (!%p15_p4) target bundleno = 1 (0x1), region = 87 }

</bundles_post_ra>
